<compile_context>
chip_gen: v6e
topology: v6e:2x2x1
jax: 0.10.0
libtpu: 0.0.40
codegen_flags: <defaults>
</compile_context>

<pallas_src>
import math
import jax
import jax.numpy as jnp
from jax.experimental import pallas as pl
from jax.experimental.pallas import tpu as pltpu


def mlp_kernel(x_ref, w1_ref, b1_ref, w2_ref, b2_ref, o_ref):
    # x_ref:  (tm, nfeat_p)  VMEM tile of input rows
    # w1_ref: (nfeat_p, nhid_p), b1_ref: (1, nhid_p)
    # w2_ref: (nhid_p, nclass_p), b2_ref: (1, nclass_p)
    x = x_ref[...]
    h = jnp.dot(x, w1_ref[...], preferred_element_type=jnp.float32)
    h = jnp.maximum(h + b1_ref[...], 0.0)          # ReLU on the VPU (f32)
    # Keep both operands of the second matmul in the native weight dtype
    # (bf16 x bf16 MXU path on v6e/v7x); accumulation stays f32.
    h = h.astype(w2_ref.dtype)
    out = jnp.dot(h, w2_ref[...], preferred_element_type=jnp.float32) + b2_ref[...]
    o_ref[...] = out.astype(o_ref.dtype)


def _round_up(a, m):
    return (a + m - 1) // m * m


def mlp_forward(x, w1, b1, w2, b2, *, tm=256):
    """Fused two-layer MLP forward (eval mode). x: [N, nfeat]."""
    N, nfeat = x.shape
    nhid = w1.shape[1]
    nclass = w2.shape[1]
    dtype = x.dtype
    itemsize = jnp.dtype(dtype).itemsize

    # Lane-dense padding: last dims -> multiples of 128, rows -> multiple of tm.
    nfeat_p = _round_up(nfeat, 128)
    nhid_p = _round_up(nhid, 128)
    nclass_p = _round_up(nclass, 128)
    tm = max(8, min(tm, _round_up(N, 8)))   # clamp tile to (padded) row count, keep x8
    N_p = _round_up(N, tm)

    # Zero-padding is exact: padded x cols x padded W1 rows contribute 0; padded
    # hidden units get bias 0 -> ReLU(0)=0 -> contribute 0 through padded W2 rows;
    # padded output columns are sliced away below.
    x_p = jnp.zeros((N_p, nfeat_p), dtype).at[:N, :nfeat].set(x)
    w1_p = jnp.zeros((nfeat_p, nhid_p), w1.dtype).at[:nfeat, :nhid].set(w1)
    b1_p = jnp.zeros((1, nhid_p), b1.dtype).at[0, :nhid].set(b1)
    w2_p = jnp.zeros((nhid_p, nclass_p), w2.dtype).at[:nhid, :nclass].set(w2)
    b2_p = jnp.zeros((1, nclass_p), b2.dtype).at[0, :nclass].set(b2)

    grid = (N_p // tm,)

    # --- VMEM budget (weights are double-buffered by the pipeline even though
    # their index map is constant; x/out tiles double-buffered too). ---
    weight_bytes = itemsize * (nfeat_p * nhid_p + nhid_p * nclass_p + nhid_p + nclass_p)
    tile_bytes = itemsize * tm * (nfeat_p + nclass_p)
    f32_intermediate_bytes = 4 * tm * (nhid_p + nclass_p)
    vmem_bytes = 2 * (weight_bytes + tile_bytes) + f32_intermediate_bytes

    compiler_kwargs = dict(dimension_semantics=("parallel",))
    if vmem_bytes > (16 << 20):
        # Raise the scoped-VMEM limit only when the resident layout needs it;
        # cap at 56 MiB so the budget also fits v7x's 64 MiB per-TC VMEM.
        compiler_kwargs["vmem_limit_bytes"] = int(
            min(max(vmem_bytes * 5 // 4, 32 << 20), 56 << 20))
    compiler_params = pltpu.CompilerParams(**compiler_kwargs)

    cost_estimate = pl.CostEstimate(
        flops=2 * N_p * (nfeat_p * nhid_p + nhid_p * nclass_p),
        transcendentals=0,
        bytes_accessed=itemsize * (x_p.size + w1_p.size + b1_p.size
                                   + w2_p.size + b2_p.size + N_p * nclass_p),
    )

    out_p = pl.pallas_call(
        mlp_kernel,
        out_shape=jax.ShapeDtypeStruct((N_p, nclass_p), dtype),
        grid_spec=pltpu.PrefetchScalarGridSpec(
            num_scalar_prefetch=0,
            grid=grid,
            in_specs=[
                pl.BlockSpec((tm, nfeat_p), lambda i: (i, 0)),       # x row tile
                pl.BlockSpec((nfeat_p, nhid_p), lambda i: (0, 0)),   # W1 (resident)
                pl.BlockSpec((1, nhid_p), lambda i: (0, 0)),         # b1
                pl.BlockSpec((nhid_p, nclass_p), lambda i: (0, 0)),  # W2 (resident)
                pl.BlockSpec((1, nclass_p), lambda i: (0, 0)),       # b2
            ],
            out_specs=pl.BlockSpec((tm, nclass_p), lambda i: (i, 0)),  # lane-dense
        ),
        compiler_params=compiler_params,
        cost_estimate=cost_estimate,
    )(x_p, w1_p, b1_p, w2_p, b2_p)

    return out_p[:N, :nclass]


def init_mlp_params(key, nfeat, nhid, nclass, dtype=jnp.float32):
    # Mirrors MLPLayer.reset_parameters: normal_(mean=-stdv, std=stdv), stdv = 1/sqrt(out_features)
    k1, k2, k3, k4 = jax.random.split(key, 4)
    stdv1 = 1.0 / math.sqrt(nhid)
    stdv2 = 1.0 / math.sqrt(nclass)
    w1 = jax.random.normal(k1, (nfeat, nhid), dtype) * stdv1 - stdv1
    b1 = jax.random.normal(k2, (nhid,), dtype) * stdv1 - stdv1
    w2 = jax.random.normal(k3, (nhid, nclass), dtype) * stdv2 - stdv2
    b2 = jax.random.normal(k4, (nclass,), dtype) * stdv2 - stdv2
    return w1, b1, w2, b2


if __name__ == "__main__":
    key = jax.random.PRNGKey(0)
    kx, kp = jax.random.split(key)

    # Small, deliberately non-aligned shapes to exercise the padding paths.
    N, nfeat, nhid, nclass = 300, 20, 33, 7
    x = jax.random.normal(kx, (N, nfeat), jnp.float32)
    w1, b1, w2, b2 = init_mlp_params(kp, nfeat, nhid, nclass)

    out = mlp_forward(x, w1, b1, w2, b2, tm=256)
    out = jax.block_until_ready(out)

    # Reference check in plain JAX (eval-mode MLP: dropout identity, no BN).
    ref = jnp.maximum(x @ w1 + b1, 0.0) @ w2 + b2
    assert out.shape == (N, nclass)
    assert jnp.allclose(out, ref, atol=1e-5, rtol=1e-5), "mismatch vs reference"

    print("KERNEL_OK")
</pallas_src>

<mosaic_0001>
module attributes {stable_mosaic.version = 11 : i64} {
  func.func @mlp_kernel(%arg0: i32, %arg1: memref<256x128xf32, #tpu.memory_space<vmem>>, %arg2: memref<128x128xf32, #tpu.memory_space<vmem>>, %arg3: memref<1x128xf32, #tpu.memory_space<vmem>>, %arg4: memref<128x128xf32, #tpu.memory_space<vmem>>, %arg5: memref<1x128xf32, #tpu.memory_space<vmem>>, %arg6: memref<256x128xf32, #tpu.memory_space<vmem>>) attributes {dimension_semantics = [#tpu.dimension_semantics<parallel>], iteration_bounds = array<i64: 2>, scalar_prefetch = 0 : i64, scratch_operands = 0 : i64, tpu.core_type = #tpu.core_type<tc>, window_params = [{transform_indices = @transform_0, window_bounds = array<i64: 256, 128>}, {pipeline_mode = #tpu.pipeline_mode<synchronous>, transform_indices = @transform_1, window_bounds = array<i64: 128, 128>}, {pipeline_mode = #tpu.pipeline_mode<synchronous>, transform_indices = @transform_2, window_bounds = array<i64: 1, 128>}, {pipeline_mode = #tpu.pipeline_mode<synchronous>, transform_indices = @transform_3, window_bounds = array<i64: 128, 128>}, {pipeline_mode = #tpu.pipeline_mode<synchronous>, transform_indices = @transform_4, window_bounds = array<i64: 1, 128>}, {transform_indices = @transform_5, window_bounds = array<i64: 256, 128>}]} {
    %c0 = arith.constant 0 : index
    %c0_0 = arith.constant 0 : index
    %0 = vector.load %arg1[%c0, %c0_0] : memref<256x128xf32, #tpu.memory_space<vmem>>, vector<256x128xf32>
    %c0_1 = arith.constant 0 : index
    %c0_2 = arith.constant 0 : index
    %1 = vector.load %arg2[%c0_1, %c0_2] : memref<128x128xf32, #tpu.memory_space<vmem>>, vector<128x128xf32>
    %cst = arith.constant dense<0.000000e+00> : vector<256x128xf32>
    %2 = tpu.matmul %0, %1, %cst {dimension_numbers = #tpu.dot_dimension_numbers<[1], [0], [0], [1], [0, 0, 1, 1], [], []>} : vector<256x128xf32>, vector<128x128xf32>, vector<256x128xf32> -> vector<256x128xf32>
    %c0_3 = arith.constant 0 : index
    %c0_4 = arith.constant 0 : index
    %3 = vector.load %arg3[%c0_3, %c0_4] : memref<1x128xf32, #tpu.memory_space<vmem>>, vector<1x128xf32>
    %4 = vector.broadcast %3 : vector<1x128xf32> to vector<256x128xf32>
    %5 = arith.addf %2, %4 : vector<256x128xf32>
    %cst_5 = arith.constant 0.000000e+00 : f32
    %6 = vector.broadcast %cst_5 : f32 to vector<256x128xf32>
    %7 = arith.maximumf %5, %6 : vector<256x128xf32>
    %c0_6 = arith.constant 0 : index
    %c0_7 = arith.constant 0 : index
    %8 = vector.load %arg4[%c0_6, %c0_7] : memref<128x128xf32, #tpu.memory_space<vmem>>, vector<128x128xf32>
    %cst_8 = arith.constant dense<0.000000e+00> : vector<256x128xf32>
    %9 = tpu.matmul %7, %8, %cst_8 {dimension_numbers = #tpu.dot_dimension_numbers<[1], [0], [0], [1], [0, 0, 1, 1], [], []>} : vector<256x128xf32>, vector<128x128xf32>, vector<256x128xf32> -> vector<256x128xf32>
    %c0_9 = arith.constant 0 : index
    %c0_10 = arith.constant 0 : index
    %10 = vector.load %arg5[%c0_9, %c0_10] : memref<1x128xf32, #tpu.memory_space<vmem>>, vector<1x128xf32>
    %11 = vector.broadcast %10 : vector<1x128xf32> to vector<256x128xf32>
    %12 = arith.addf %9, %11 : vector<256x128xf32>
    %c0_11 = arith.constant 0 : index
    %c0_12 = arith.constant 0 : index
    %13 = vector.load %arg6[%c0_11, %c0_12] : memref<256x128xf32, #tpu.memory_space<vmem>>, vector<256x128xf32>
    tpu.vector_store %arg6[%c0_11, %c0_12], %12 {strides = array<i32>} : memref<256x128xf32, #tpu.memory_space<vmem>>, vector<256x128xf32>,
    return
  }
  func.func @transform_0(%arg0: i32) -> (i32, i32) {
    %c0_i32 = arith.constant 0 : i32
    %c0_i32_0 = arith.constant 0 : i32
    return %arg0, %c0_i32 : i32, i32
  }
  func.func @transform_1(%arg0: i32) -> (i32, i32) {
    %c0_i32 = arith.constant 0 : i32
    %c0_i32_0 = arith.constant 0 : i32
    %c0_i32_1 = arith.constant 0 : i32
    return %c0_i32, %c0_i32_0 : i32, i32
  }
  func.func @transform_2(%arg0: i32) -> (i32, i32) {
    %c0_i32 = arith.constant 0 : i32
    %c0_i32_0 = arith.constant 0 : i32
    %c0_i32_1 = arith.constant 0 : i32
    return %c0_i32, %c0_i32_0 : i32, i32
  }
  func.func @transform_3(%arg0: i32) -> (i32, i32) {
    %c0_i32 = arith.constant 0 : i32
    %c0_i32_0 = arith.constant 0 : i32
    %c0_i32_1 = arith.constant 0 : i32
    return %c0_i32, %c0_i32_0 : i32, i32
  }
  func.func @transform_4(%arg0: i32) -> (i32, i32) {
    %c0_i32 = arith.constant 0 : i32
    %c0_i32_0 = arith.constant 0 : i32
    %c0_i32_1 = arith.constant 0 : i32
    return %c0_i32, %c0_i32_0 : i32, i32
  }
  func.func @transform_5(%arg0: i32) -> (i32, i32) {
    %c0_i32 = arith.constant 0 : i32
    %c0_i32_0 = arith.constant 0 : i32
    return %arg0, %c0_i32 : i32, i32
  }
}

</mosaic_0001>

<bundles_post_ra>
// kernel: tpu_custom_call.1
= control target key start
LH: loop header
LB: loop body
LE: loop exit
PB: predicated region body
PF: predicated region fallthrough
CT: control target
= control target key end

     0   :  { %10 = vsyncpa [#allocation3], 0  ;;  %s1853_s0 = inlined_call_operand.hbm [shape: f32[512,128], index: 0, kind: input, shape index: {}]   ;;  %s1854_s1 = inlined_call_operand.hbm [shape: f32[128,128], index: 1, kind: input, shape index: {}]   ;;  %s1855_s2 = inlined_call_operand.vmem [shape: f32[1,128], index: 2, kind: input, shape index: {}]   ;;  %s1856_s3 = inlined_call_operand.hbm [shape: f32[128,128], index: 3, kind: input, shape index: {}]   ;;  %s1857_s4 = inlined_call_operand.vmem [shape: f32[1,128], index: 4, kind: input, shape index: {}]   ;;  %s1858_s5 = inlined_call_operand.hbm [shape: f32[512,128], index: 5, kind: output, shape index: {}]  }
   0x1   :  { %12 = vsyncpa [#allocation3 + $0x1], 0 }
   0x2   :  { %13 = vsyncpa [#allocation6], 0 }
   0x3   :  { %14 = vsyncpa [#allocation4], 0 }
   0x4   :  { %16 = vsyncpa [#allocation4 + $0x1], 0  ;;  %s1509_s18 = smov 0   ;;  %s1511_s19 = smov 0  }
   0x5   :  { %s1513_s20 = smov 0   ;;  %s1515_s21 = smov 0  }
   0x6 LB: > { %s1530_s22 = sadd.s32 4294967295, %s1469_s21   ;;  %s972_s23 = sadd.s32 4294967294, %s1469_s21   ;;  %s1469_s21 = sphi %s1515_s21, %s1881_s21   ;;  %s1465_s20 = sphi %s1513_s20, %s1880_s20   ;;  %s1461_s19 = sphi %s1511_s19, %s1879_s19   ;;  %s1457_s18 = sphi %s1509_s18, %s1878_s18  }
   0x7   : > { %p42_p0 = scmp.ne.s32.totalorder %s1461_s19, %s1457_s18  ;;  %p1859_p1 = scmp.eq.s32.totalorder %s1530_s22, 0 }
   0x8   : > { %p150_p2 = scmp.eq.s32.totalorder %s1530_s22, 1  ;;  %p156_p3 = scmp.eq.s32.totalorder %s972_s23, 1 }
   0x9   : > { %p1539_p4 = por %p1859_p1, %p42_p0  ;;  %p973_p5 = scmp.ge.s32.totalorder %s1469_s21, 1 }
   0xa   : > { %p1544_p6 = por %p156_p3, %p42_p0  ;;  %p163_p7 = scmp.lt.s32.totalorder %s1469_s21, 3 }
   0xb   : > { %s1864_s24 = scalar_select %p1539_p4, 1, 0 }
   0xc   : > { %s1865_s25 = scalar_select %p1544_p6, 1, 0 }
   0xd   : > { %p1549_p8 = pnand %p973_p5, %p163_p7  ;;  %s1471_s27 = smov [#allocation5]  }
   0xe   : > { %s175_s28 = sshll.u32 %s1471_s27, 4  ;;  %s1472_s30 = smov [#allocation7]   ;;  %s176_s28 = int_to_ptr.vmem [resolvable:$true] %s175_s28 }
   0xf   : > { %s1866_s26 = scalar_select %p1549_p8, 1, 0 }
  0x10   : > { %p1262_p9 = pneg %p1549_p8  ;;  %s191_s6 = sshll.u32 %s1472_s30, 4  ;;  %s192_s6 = int_to_ptr.vmem [resolvable:$true] %s191_s6 }
  0x11   : > { %s1332_s7 = scalar_lea.vmem %s176_s28, 2048  ;;  %p1340_p5 = scmp.lt.s32.totalorder %s176_s28, %s176_s28 }
  0x12   : > { %p1558_p11 = pnand %p1262_p9, %p1859_p1  ;;  %p1333_p13 = scmp.ne.s32.totalorder %s176_s28, %s1332_s7 }
  0x13   : > { %p1341_p7 = scmp.lt.s32.totalorder %s1332_s7, %s1332_s7 }
  0x14   : > { %p1323_p12 = pneg %p1558_p11 }
  0x15   : > { %p1342_p10 = por %p1341_p7, %p1340_p5 }
  0x16   : > { %p1335_p0 = pnand %p1333_p13, %p1323_p12 }
  0x18   : > { %p1336_p3 = pneg %p1335_p0 }
  0x1a   : > { %p1343_p9 = pnand %p1342_p10, %p1336_p3 }
  0x1c   : > { %1346 = shalt.err (!%p1343_p9)
}
  0x1d   : > { %s1860_s8 = smov 128   ;;  %s1474_s9 = smov 8  }
  0x1e   : > { %1265 = dma.hbm_to_vmem [thread:$0]  (!%p1558_p11), %s1854_s1, 2048, %s176_s28, [#allocation6], %s1860_s8, %s1860_s8, %s1474_s9  }
  0x1f   : > { %s1358_s12 = scalar_lea.vmem %s192_s6, 2048  ;;  %p1366_p10 = scmp.lt.s32.totalorder %s192_s6, %s192_s6 }
  0x20   : > { %p1359_p13 = scmp.ne.s32.totalorder %s192_s6, %s1358_s12  ;;  %p1367_p3 = scmp.lt.s32.totalorder %s1358_s12, %s1358_s12 }
  0x22   : > { %p1361_p0 = pnand %p1359_p13, %p1323_p12  ;;  %p1368_p7 = por %p1367_p3, %p1366_p10 }
  0x24   : > { %p1362_p5 = pneg %p1361_p0 }
  0x26   : > { %p1369_p9 = pnand %p1368_p7, %p1362_p5 }
  0x28   : > { %1372 = shalt.err (!%p1369_p9)
}
  0x29   : > { %1268 = dma.hbm_to_vmem [thread:$0]  (!%p1558_p11), %s1856_s3, 2048, %s192_s6, [#allocation6], %s1860_s8, %s1860_s8, %s1474_s9  }
  0x2a   : > { %s1587_s15 = sadd.s32 1, %s1469_s21   ;;  %s29_s16 = sadd.s32 1, %s1465_s20 }
  0x2b   : > { %s26_s17 = ssub.s32 %s1469_s21, %s1587_s15  ;;  %p36_p12 = scmp.ne.s32.totalorder %s1465_s20, %s1461_s19 }
  0x2c   : > { %p27_p13 = scmp.eq.s32.totalorder %s26_s17, 0  ;;  %p37_p0 = scmp.eq.s32.totalorder %s1469_s21, 0 }
  0x2d   : > { %p1597_p5 = por %p150_p2, %p36_p12  ;;  %p1279_p10 = scmp.lt.s32.totalorder %s1469_s21, 2 }
  0x2e   : > { %s1603_s27 = scalar_select %p27_p13, %s1465_s20, %s29_s16  }
  0x2f   : > { %s1868_s23 = scalar_select %p1597_p5, 1, 0 }
  0x30   : > { %p38_p3 = por %p37_p0, %p36_p12  ;;  %s208_s28 = sand.u32 1, %s1465_s20  }
  0x31   : > { %s977_s29 = sshll.u32 %s208_s28, 8  ;;  %s992_s30 = sshll.u32 %s1469_s21, 12 }
  0x32   : > { %s1610_s10 = scalar_lea.hbm %s1853_s0, %s992_s30  ;;  %s212_s11 = scalar_lea.vmem [#allocation2], %s977_s29 }
  0x33   : > { %s219_s12 = sshll.u32 %s212_s11, 4  ;;  %p1614_p2 = pnand %p1279_p10, %p38_p3  ;;  %s1612_s12 = int_to_ptr.vmem [resolvable:$true] %s219_s12 }
  0x34   : > { %s1618_s14 = scalar_lea.sflag [#allocation3], %s208_s28  ;;  %s1373_s16 = scalar_lea.hbm %s1610_s10, 4096 }
  0x35   : > { %p1374_p11 = scmp.ne.s32.totalorder %s1610_s10, %s1373_s16  ;;  %p1375_p7 = pneg %p1614_p2 }
  0x36   : > { %s1378_s29 = scalar_lea.hbm %s1853_s0, 8192  ;;  %p1379_p13 = scmp.lt.s32.totalorder %s1610_s10, %s1853_s0 }
  0x37   : > { %p1376_p9 = pnand %p1375_p7, %p1374_p11  ;;  %p1380_p0 = scmp.lt.s32.totalorder %s1378_s29, %s1373_s16 }
  0x39   : > { %p1377_p12 = pneg %p1376_p9  ;;  %p1381_p10 = por %p1380_p0, %p1379_p13 }
  0x3b   : > { %p1382_p3 = pnand %p1381_p10, %p1377_p12 }
  0x3d   : > { %1385 = shalt.err (!%p1382_p3)
}
  0x3e   : > { %s1386_s28 = scalar_lea.vmem %s1612_s12, 4096  ;;  %s1475_s11 = smov [#allocation2]  }
  0x3f   : > { %p1387_p1 = scmp.ne.s32.totalorder %s1612_s12, %s1386_s28  ;;  %s1391_s8 = sshll.u32 %s1475_s11, 4  ;;  %s1392_s8 = int_to_ptr.vmem [resolvable:$false] %s1391_s8 }
  0x40   : > { %s1393_s17 = scalar_lea.vmem %s1392_s8, 8192  ;;  %p1394_p9 = scmp.lt.s32.totalorder %s1612_s12, %s1392_s8 }
  0x41   : > { %p1389_p6 = pnand %p1387_p1, %p1375_p7  ;;  %p1395_p5 = scmp.lt.s32.totalorder %s1393_s17, %s1386_s28 }
  0x43   : > { %p1390_p11 = pneg %p1389_p6  ;;  %p1396_p4 = por %p1395_p5, %p1394_p9 }
  0x45   : > { %p1397_p8 = pnand %p1396_p4, %p1390_p11 }
  0x47   : > { %1400 = shalt.err (!%p1397_p8)
}
  0x48   : > { %s1870_s16 = smov 128   ;;  %p1871_p1 = scmp.ne.s32.totalorder %s1866_s26, 0 }
  0x49   : > { %1272 = dma.hbm_to_vmem [thread:$0]  (!%p1614_p2), %s1610_s10, 4096, %s1612_s12, %s1618_s14, %s1870_s16, %s1870_s16, %s1474_s9  }
  0x4a   : > { %231 = sbr.rel (%p1871_p1) target bundleno = 587 (0x24b), region = 40  ;;  %s1645_s30 = sand.u32 (!%p1871_p1), 1, %s1461_s19  }
  0x4b   : > { %s981_s8 = sshll.u32 (!%p1871_p1), %s1645_s30, 8  ;;  %s234_s29 = scalar_lea.sflag (!%p1871_p1), [#allocation3], %s1645_s30 }
  0x4c   : > { %s1651_s13 = scalar_lea.vmem (!%p1871_p1), [#allocation2], %s981_s8  ;;  %p1872_p4 = scmp.ne.s32.totalorder (!%p1871_p1), %s1864_s24, 0 }
  0x4f   : > { %1444 = dma.done.wait (%p1872_p4), %s234_s29, 4096  }
  0x50   : > { %1446 = vsyncadd (%p1872_p4), %s234_s29, 4294963200  ;;  %p1873_p6 = scmp.eq.s32.totalorder %s1530_s22, 0 }
  0x52   : > { %1448 = dma.done.wait (%p1873_p6), [#allocation6], 4096   ;;  %p1874_p8 = pmov %p1873_p6 }
  0x53   : > { %v321_v0 = vld [vmem:[#allocation5 + $0x78] sm:$0xff]  ;;  %v320_v1 = vld [vmem:[#allocation5 + $0x70] sm:$0xff]  ;;  %v319_v2 = vld [vmem:[#allocation5 + $0x68] sm:$0xff]  ;;  %s1738_s12 = scalar_lea.vmem [#allocation8], %s981_s8  ;;  %s993_s14 = sshll.u32 %s1530_s22, 12 }
  0x54   : > { %1450 = vsyncadd (%p1874_p8), [#allocation6], 4294963200  ;;  %1090 = vmatprep.subr.mxu0 %v321_v0  ;;  %v318_v3 = vld [vmem:[#allocation5 + $0x60] sm:$0xff]  ;;  %v317_v5 = vld [vmem:[#allocation5 + $0x58] sm:$0xff]  ;;  %s880_s6 = sshll.u32 %s1738_s12, 4  ;;  %s1805_s11 = scalar_lea.hbm %s1858_s5, %s993_s14  ;;  %s1807_s6 = int_to_ptr.vmem [resolvable:$true] %s880_s6 }
  0x55   : > { %1091 = vmatpush3.msra.mxu0 %v321_v0  ;;  %v274_v4 = vld [vmem:[%s1651_s13] sm:$0xff]  ;;  %v316_v6 = vld [vmem:[#allocation5 + $0x50] sm:$0xff]  ;;  %v315_v7 = vld [vmem:[#allocation5 + $0x48] sm:$0xff]  ;;  %s867_s22 = scalar_lea.sflag [#allocation4], %s1645_s30  ;;  %s1401_s17 = scalar_lea.vmem %s1807_s6, 4096 }
  0x56   : > { %1092 = vmatprep.subr.mxu0 %v320_v1  ;;  %1122 = vmatprep.mubr.f32.mxu0 %v274_v4  ;;  %v314_v8 = vld [vmem:[#allocation5 + $0x40] sm:$0xff]  ;;  %v313_v9 = vld [vmem:[#allocation5 + $0x38] sm:$0xff]  ;;  %v312_v10 = vld [vmem:[#allocation5 + $0x30] sm:$0xff]  ;;  %p1402_p5 = scmp.ne.s32.totalorder %s1807_s6, %s1401_s17  ;;  %p1875_p2 = scmp.ne.s32.totalorder %s1868_s23, 0 }
  0x57   : > { %1093 = vmatpush3.msra.mxu0 %v320_v1  ;;  %v601_v11 = vld [vmem:[#allocation7 + $0x78] sm:$0xff]  ;;  %v600_v12 = vld [vmem:[#allocation7 + $0x70] sm:$0xff]  ;;  %v311_v13 = vld [vmem:[#allocation5 + $0x28] sm:$0xff]  ;;  %s1476_s16 = smov [#allocation8]  }
  0x58   : > { %1094 = vmatprep.subr.mxu0 %v319_v2  ;;  %1170 = vmatprep.subr.mxu1 %v601_v11  ;;  %v599_v14 = vld [vmem:[#allocation7 + $0x68] sm:$0xff]  ;;  %v310_v15 = vld [vmem:[#allocation5 + $0x20] sm:$0xff]  ;;  %v309_v17 = vld [vmem:[#allocation5 + $0x18] sm:$0xff]  ;;  %p1403_p7 = pnand %p1402_p5, %p1875_p2  ;;  %s1405_s8 = sshll.u32 %s1476_s16, 4  ;;  %s1406_s8 = int_to_ptr.vmem [resolvable:$false] %s1405_s8 }
  0x59   : > { %1095 = vmatpush3.msra.mxu0 %v319_v2  ;;  %1171 = vmatpush3.msra.mxu1 %v601_v11  ;;  %v598_v16 = vld [vmem:[#allocation7 + $0x60] sm:$0xff]  ;;  %v597_v18 = vld [vmem:[#allocation7 + $0x58] sm:$0xff]  ;;  %v308_v19 = vld [vmem:[#allocation5 + $0x10] sm:$0xff]  ;;  %s1407_s29 = scalar_lea.vmem %s1406_s8, 8192  ;;  %p1408_p13 = scmp.lt.s32.totalorder %s1807_s6, %s1406_s8 }
  0x5a   : > { %1096 = vmatprep.subr.mxu0 %v318_v3  ;;  %1172 = vmatprep.subr.mxu1 %v600_v12  ;;  %v596_v20 = vld [vmem:[#allocation7 + $0x50] sm:$0xff]  ;;  %v307_v21 = vld [vmem:[#allocation5 + $0x8] sm:$0xff]  ;;  %v306_v23 = vld [vmem:[#allocation5] sm:$0xff]  ;;  %p1404_p12 = pneg %p1403_p7  ;;  %p1409_p0 = scmp.lt.s32.totalorder %s1407_s29, %s1401_s17 }
  0x5b   : > { %1097 = vmatpush3.msra.mxu0 %v318_v3  ;;  %1173 = vmatpush3.msra.mxu1 %v600_v12  ;;  %v595_v22 = vld [vmem:[#allocation7 + $0x48] sm:$0xff]  ;;  %v594_v24 = vld [vmem:[#allocation7 + $0x40] sm:$0xff]  ;;  %v593_v26 = vld [vmem:[#allocation7 + $0x38] sm:$0xff] }
  0x5c   : > { %1098 = vmatprep.subr.mxu0 %v317_v5  ;;  %1174 = vmatprep.subr.mxu1 %v599_v14  ;;  %v275_v25 = vld [vmem:[%s1651_s13 + $0x8] sm:$0xff]  ;;  %v276_v27 = vld [vmem:[%s1651_s13 + $0x10] sm:$0xff]  ;;  %v277_v29 = vld [vmem:[%s1651_s13 + $0x18] sm:$0xff]  ;;  %p1410_p10 = por %p1409_p0, %p1408_p13 }
  0x5d   : > { %1099 = vmatpush3.msra.mxu0 %v317_v5  ;;  %1175 = vmatpush3.msra.mxu1 %v599_v14  ;;  %v592_v28 = vld [vmem:[#allocation7 + $0x30] sm:$0xff]  ;;  %v591_v30 = vld [vmem:[#allocation7 + $0x28] sm:$0xff]  ;;  %v278_v31 = vld [vmem:[%s1651_s13 + $0x20] sm:$0xff] }
  0x5e   : > { %1100 = vmatprep.subr.mxu0 %v316_v6  ;;  %1176 = vmatprep.subr.mxu1 %v598_v16  ;;  %v590_v32 = vld [vmem:[#allocation7 + $0x20] sm:$0xff]  ;;  %v279_v33 = vld [vmem:[%s1651_s13 + $0x28] sm:$0xff]  ;;  %v280_v34 = vld [vmem:[%s1651_s13 + $0x30] sm:$0xff]  ;;  %p1411_p3 = pnand %p1410_p10, %p1404_p12 }
  0x5f   : > { %1101 = vmatpush3.msra.mxu0 %v316_v6  ;;  %1177 = vmatpush3.msra.mxu1 %v598_v16  ;;  %v281_v35 = vld [vmem:[%s1651_s13 + $0x38] sm:$0xff]  ;;  %v282_v36 = vld [vmem:[%s1651_s13 + $0x40] sm:$0xff]  ;;  %v283_v37 = vld [vmem:[%s1651_s13 + $0x48] sm:$0xff] }
  0x60   : > { %1102 = vmatprep.subr.mxu0 %v315_v7  ;;  %1178 = vmatprep.subr.mxu1 %v597_v18  ;;  %v284_v38 = vld [vmem:[%s1651_s13 + $0x50] sm:$0xff]  ;;  %v285_v39 = vld [vmem:[%s1651_s13 + $0x58] sm:$0xff]  ;;  %v286_v40 = vld [vmem:[%s1651_s13 + $0x60] sm:$0xff] }
  0x61   : > { %1103 = vmatpush3.msra.mxu0 %v315_v7  ;;  %1179 = vmatpush3.msra.mxu1 %v597_v18  ;;  %v287_v41 = vld [vmem:[%s1651_s13 + $0x68] sm:$0xff]  ;;  %v288_v42 = vld [vmem:[%s1651_s13 + $0x70] sm:$0xff]  ;;  %v289_v43 = vld [vmem:[%s1651_s13 + $0x78] sm:$0xff] }
  0x62   : > { %1104 = vmatprep.subr.mxu0 %v314_v8  ;;  %1180 = vmatprep.subr.mxu1 %v596_v20  ;;  %v290_v44 = vld [vmem:[%s1651_s13 + $0x80] sm:$0xff]  ;;  %v291_v45 = vld [vmem:[%s1651_s13 + $0x88] sm:$0xff]  ;;  %v292_v46 = vld [vmem:[%s1651_s13 + $0x90] sm:$0xff] }
  0x63   : > { %1105 = vmatpush3.msra.mxu0 %v314_v8  ;;  %1181 = vmatpush3.msra.mxu1 %v596_v20  ;;  %v293_v47 = vld [vmem:[%s1651_s13 + $0x98] sm:$0xff]  ;;  %v294_v48 = vld [vmem:[%s1651_s13 + $0xa0] sm:$0xff]  ;;  %v295_v49 = vld [vmem:[%s1651_s13 + $0xa8] sm:$0xff] }
  0x64   : > { %1106 = vmatprep.subr.mxu0 %v313_v9  ;;  %1182 = vmatprep.subr.mxu1 %v595_v22  ;;  %v296_v50 = vld [vmem:[%s1651_s13 + $0xb0] sm:$0xff]  ;;  %v297_v51 = vld [vmem:[%s1651_s13 + $0xb8] sm:$0xff]  ;;  %v298_v52 = vld [vmem:[%s1651_s13 + $0xc0] sm:$0xff] }
  0x65   : > { %1107 = vmatpush3.msra.mxu0 %v313_v9  ;;  %1183 = vmatpush3.msra.mxu1 %v595_v22  ;;  %v299_v53 = vld [vmem:[%s1651_s13 + $0xc8] sm:$0xff]  ;;  %v300_v54 = vld [vmem:[%s1651_s13 + $0xd0] sm:$0xff]  ;;  %v301_v55 = vld [vmem:[%s1651_s13 + $0xd8] sm:$0xff] }
  0x66   : > { %1108 = vmatprep.subr.mxu0 %v312_v10  ;;  %1184 = vmatprep.subr.mxu1 %v594_v24  ;;  %v302_v56 = vld [vmem:[%s1651_s13 + $0xe0] sm:$0xff]  ;;  %v303_v57 = vld [vmem:[%s1651_s13 + $0xe8] sm:$0xff]  ;;  %v304_v58 = vld [vmem:[%s1651_s13 + $0xf0] sm:$0xff] }
  0x67   : > { %1109 = vmatpush3.msra.mxu0 %v312_v10  ;;  %1185 = vmatpush3.msra.mxu1 %v594_v24  ;;  %v305_v59 = vld [vmem:[%s1651_s13 + $0xf8] sm:$0xff]  ;;  %v588_v61 = vld [vmem:[#allocation7 + $0x10] sm:$0xff]  ;;  %v587_v62 = vld [vmem:[#allocation7 + $0x8] sm:$0xff] }
  0x68   : > { %1110 = vmatprep.subr.mxu0 %v311_v13  ;;  %1186 = vmatprep.subr.mxu1 %v593_v26  ;;  %v589_v60 = vld [vmem:[#allocation7 + $0x18] sm:$0xff]  ;;  %v586_v63 = vld [vmem:[#allocation7] sm:$0xff] }
  0x69   : > { %1111 = vmatpush3.msra.mxu0 %v311_v13  ;;  %1187 = vmatpush3.msra.mxu1 %v593_v26  ;;  %v1696_v0 = vld [vmem:[%s1855_s2] ss:$0 sm:$0xff] }
  0x6a   : > { %1112 = vmatprep.subr.mxu0 %v310_v15  ;;  %1188 = vmatprep.subr.mxu1 %v592_v28 }
  0x6b   : > { %1113 = vmatpush3.msra.mxu0 %v310_v15  ;;  %1189 = vmatpush3.msra.mxu1 %v592_v28 }
  0x6c   : > { %1114 = vmatprep.subr.mxu0 %v309_v17  ;;  %1190 = vmatprep.subr.mxu1 %v591_v30 }
  0x6d   : > { %1115 = vmatpush3.msra.mxu0 %v309_v17  ;;  %1191 = vmatpush3.msra.mxu1 %v591_v30 }
  0x6e   : > { %1116 = vmatprep.subr.mxu0 %v308_v19  ;;  %1192 = vmatprep.subr.mxu1 %v590_v32 }
  0x6f   : > { %1117 = vmatpush3.msra.mxu0 %v308_v19  ;;  %1193 = vmatpush3.msra.mxu1 %v590_v32 }
  0x70   : > { %1118 = vmatprep.subr.mxu0 %v307_v21  ;;  %1194 = vmatprep.subr.mxu1 %v589_v60 }
  0x71   : > { %1119 = vmatpush3.msra.mxu0 %v307_v21  ;;  %1195 = vmatpush3.msra.mxu1 %v589_v60 }
  0x72   : > { %1120 = vmatprep.subr.mxu0 %v306_v23  ;;  %1196 = vmatprep.subr.mxu1 %v588_v61 }
  0x73   : > { %1121 = vmatpush3.msra.mxu0 %v306_v23  ;;  %1197 = vmatpush3.msra.mxu1 %v588_v61 }
  0x74   : > { %1123 = vmatmul.mubr.f32.vlgmr.msra.gmra.mxu0 %v275_v25  ;;  %1198 = vmatprep.subr.mxu1 %v587_v62 }
  0x75   : > { %1125 = vmatprep.mubr.f32.mxu0 %v276_v27  ;;  %1199 = vmatpush3.msra.mxu1 %v587_v62 }
  0x76   : > { %1200 = vmatprep.subr.mxu1 %v586_v63 }
  0x77   : > { %1201 = vmatpush3.msra.mxu1 %v586_v63 }
  0x78   : > { %1126 = vmatmul.mubr.f32.gmra.mxu0 %v277_v29 }
  0x79   : > { %1128 = vmatprep.mubr.f32.mxu0 %v278_v31 }
  0x7c   : > { %1129 = vmatmul.mubr.f32.gmra.mxu0 %v279_v33 }
  0x7d   : > { %1131 = vmatprep.mubr.f32.mxu0 %v280_v34 }
  0x80   : > { %1132 = vmatmul.mubr.f32.gmra.mxu0 %v281_v35 }
  0x81   : > { %1134 = vmatprep.mubr.f32.mxu0 %v282_v36 }
  0x84   : > { %1135 = vmatmul.mubr.f32.gmra.mxu0 %v283_v37 }
  0x85   : > { %1137 = vmatprep.mubr.f32.mxu0 %v284_v38 }
  0x88   : > { %1138 = vmatmul.mubr.f32.gmra.mxu0 %v285_v39 }
  0x89   : > { %1140 = vmatprep.mubr.f32.mxu0 %v286_v40 }
  0x8c   : > { %1141 = vmatmul.mubr.f32.gmra.mxu0 %v287_v41 }
  0x8d   : > { %1143 = vmatprep.mubr.f32.mxu0 %v288_v42 }
  0x90   : > { %1144 = vmatmul.mubr.f32.gmra.mxu0 %v289_v43 }
  0x91   : > { %1146 = vmatprep.mubr.f32.mxu0 %v290_v44 }
  0x94   : > { %1147 = vmatmul.mubr.f32.gmra.mxu0 %v291_v45 }
  0x95   : > { %1149 = vmatprep.mubr.f32.mxu0 %v292_v46 }
  0x98   : > { %1150 = vmatmul.mubr.f32.gmra.mxu0 %v293_v47 }
  0x99   : > { %1152 = vmatprep.mubr.f32.mxu0 %v294_v48 }
  0x9c   : > { %1153 = vmatmul.mubr.f32.gmra.mxu0 %v295_v49 }
  0x9d   : > { %1155 = vmatprep.mubr.f32.mxu0 %v296_v50 }
  0xa0   : > { %1156 = vmatmul.mubr.f32.gmra.mxu0 %v297_v51 }
  0xa1   : > { %1158 = vmatprep.mubr.f32.mxu0 %v298_v52 }
  0xa4   : > { %1159 = vmatmul.mubr.f32.gmra.mxu0 %v299_v53 }
  0xa5   : > { %1161 = vmatprep.mubr.f32.mxu0 %v300_v54 }
  0xa8   : > { %1162 = vmatmul.mubr.f32.gmra.mxu0 %v301_v55 }
  0xa9   : > { %1164 = vmatprep.mubr.f32.mxu0 %v302_v56 }
  0xac   : > { %1165 = vmatmul.mubr.f32.gmra.mxu0 %v303_v57 }
  0xad   : > { %1167 = vmatprep.mubr.f32.mxu0 %v304_v58 }
  0xb0   : > { %1168 = vmatmul.mubr.f32.gmra.mxu0 %v305_v59 }
 0x134   : > { %v1124_v1 = vpop.f32.mrf.mxu0 }
 0x135   : > { %v401_v2 = vadd.f32 %v1124_v1, %v1696_v0 }
 0x136   : > { %v395_v3 = vpop.f32.mrf.mxu0 }
 0x137   : > { %v396_v4 = vadd.f32 %v1696_v0, %v395_v3  ;;  %v555_v7 = vmax.f32 %v401_v2, 0.0 }
 0x138   : > { %v1127_v5 = vpop.f32.mrf.mxu0 }
 0x139   : > { %v554_v6 = vmax.f32 %v396_v4, 0.0  ;;  %v411_v8 = vadd.f32 %v1127_v5, %v1696_v0 }
 0x13a   : > { %v405_v9 = vpop.f32.mrf.mxu0 }
 0x13b   : > { %v406_v10 = vadd.f32 %v1696_v0, %v405_v9  ;;  %1202 = vmatprep.mubr.f32.mxu1 %v554_v6  ;;  %v557_v13 = vmax.f32 %v411_v8, 0.0 }
 0x13c   : > { %v1130_v11 = vpop.f32.mrf.mxu0  ;;  %1203 = vmatmul.mubr.f32.vlgmr.msra.gmra.mxu1 %v555_v7 }
 0x13d   : > { %v556_v12 = vmax.f32 %v406_v10, 0.0  ;;  %v421_v14 = vadd.f32 %v1130_v11, %v1696_v0 }
 0x13e   : > { %v415_v15 = vpop.f32.mrf.mxu0 }
 0x13f   : > { %v416_v16 = vadd.f32 %v1696_v0, %v415_v15  ;;  %1205 = vmatprep.mubr.f32.mxu1 %v556_v12  ;;  %v559_v19 = vmax.f32 %v421_v14, 0.0 }
 0x140   : > { %v1133_v17 = vpop.f32.mrf.mxu0  ;;  %1206 = vmatmul.mubr.f32.gmra.mxu1 %v557_v13 }
 0x141   : > { %v558_v18 = vmax.f32 %v416_v16, 0.0  ;;  %v431_v20 = vadd.f32 %v1133_v17, %v1696_v0 }
 0x142   : > { %v425_v21 = vpop.f32.mrf.mxu0 }
 0x143   : > { %v426_v22 = vadd.f32 %v1696_v0, %v425_v21  ;;  %1208 = vmatprep.mubr.f32.mxu1 %v558_v18  ;;  %v561_v25 = vmax.f32 %v431_v20, 0.0 }
 0x144   : > { %v1136_v23 = vpop.f32.mrf.mxu0  ;;  %1209 = vmatmul.mubr.f32.gmra.mxu1 %v559_v19 }
 0x145   : > { %v560_v24 = vmax.f32 %v426_v22, 0.0  ;;  %v441_v26 = vadd.f32 %v1136_v23, %v1696_v0 }
 0x146   : > { %v435_v27 = vpop.f32.mrf.mxu0 }
 0x147   : > { %v436_v28 = vadd.f32 %v1696_v0, %v435_v27  ;;  %1211 = vmatprep.mubr.f32.mxu1 %v560_v24  ;;  %v563_v31 = vmax.f32 %v441_v26, 0.0 }
 0x148   : > { %v1139_v29 = vpop.f32.mrf.mxu0  ;;  %1212 = vmatmul.mubr.f32.gmra.mxu1 %v561_v25 }
 0x149   : > { %v562_v30 = vmax.f32 %v436_v28, 0.0  ;;  %v451_v32 = vadd.f32 %v1139_v29, %v1696_v0 }
 0x14a   : > { %v445_v33 = vpop.f32.mrf.mxu0 }
 0x14b   : > { %v446_v34 = vadd.f32 %v1696_v0, %v445_v33  ;;  %1214 = vmatprep.mubr.f32.mxu1 %v562_v30  ;;  %v565_v37 = vmax.f32 %v451_v32, 0.0 }
 0x14c   : > { %v1142_v35 = vpop.f32.mrf.mxu0  ;;  %1215 = vmatmul.mubr.f32.gmra.mxu1 %v563_v31 }
 0x14d   : > { %v564_v36 = vmax.f32 %v446_v34, 0.0  ;;  %v461_v38 = vadd.f32 %v1142_v35, %v1696_v0  ;;  %v1733_v34 = vld [vmem:[%s1857_s4] ss:$0 sm:$0xff] }
 0x14e   : > { %v455_v39 = vpop.f32.mrf.mxu0 }
 0x14f   : > { %v456_v40 = vadd.f32 %v1696_v0, %v455_v39  ;;  %1217 = vmatprep.mubr.f32.mxu1 %v564_v36  ;;  %v567_v43 = vmax.f32 %v461_v38, 0.0 }
 0x150   : > { %v1145_v41 = vpop.f32.mrf.mxu0  ;;  %1218 = vmatmul.mubr.f32.gmra.mxu1 %v565_v37 }
 0x151   : > { %v566_v42 = vmax.f32 %v456_v40, 0.0  ;;  %v471_v44 = vadd.f32 %v1145_v41, %v1696_v0 }
 0x152   : > { %v465_v45 = vpop.f32.mrf.mxu0 }
 0x153   : > { %v466_v46 = vadd.f32 %v1696_v0, %v465_v45  ;;  %1220 = vmatprep.mubr.f32.mxu1 %v566_v42  ;;  %v569_v49 = vmax.f32 %v471_v44, 0.0 }
 0x154   : > { %v1148_v47 = vpop.f32.mrf.mxu0  ;;  %1221 = vmatmul.mubr.f32.gmra.mxu1 %v567_v43 }
 0x155   : > { %v568_v48 = vmax.f32 %v466_v46, 0.0  ;;  %v481_v50 = vadd.f32 %v1148_v47, %v1696_v0 }
 0x156   : > { %v475_v51 = vpop.f32.mrf.mxu0 }
 0x157   : > { %v476_v52 = vadd.f32 %v1696_v0, %v475_v51  ;;  %1223 = vmatprep.mubr.f32.mxu1 %v568_v48  ;;  %v571_v55 = vmax.f32 %v481_v50, 0.0 }
 0x158   : > { %v1151_v53 = vpop.f32.mrf.mxu0  ;;  %1224 = vmatmul.mubr.f32.gmra.mxu1 %v569_v49 }
 0x159   : > { %v570_v54 = vmax.f32 %v476_v52, 0.0  ;;  %v491_v56 = vadd.f32 %v1151_v53, %v1696_v0 }
 0x15a   : > { %v485_v57 = vpop.f32.mrf.mxu0 }
 0x15b   : > { %v486_v58 = vadd.f32 %v1696_v0, %v485_v57  ;;  %1226 = vmatprep.mubr.f32.mxu1 %v570_v54  ;;  %v573_v61 = vmax.f32 %v491_v56, 0.0 }
 0x15c   : > { %v1154_v59 = vpop.f32.mrf.mxu0  ;;  %1227 = vmatmul.mubr.f32.gmra.mxu1 %v571_v55 }
 0x15d   : > { %v572_v60 = vmax.f32 %v486_v58, 0.0  ;;  %v501_v62 = vadd.f32 %v1154_v59, %v1696_v0 }
 0x15e   : > { %v495_v63 = vpop.f32.mrf.mxu0 }
 0x15f   : > { %v496_v1 = vadd.f32 %v1696_v0, %v495_v63  ;;  %1229 = vmatprep.mubr.f32.mxu1 %v572_v60  ;;  %v575_v4 = vmax.f32 %v501_v62, 0.0 }
 0x160   : > { %v1157_v2 = vpop.f32.mrf.mxu0  ;;  %1230 = vmatmul.mubr.f32.gmra.mxu1 %v573_v61 }
 0x161   : > { %v574_v3 = vmax.f32 %v496_v1, 0.0  ;;  %v511_v5 = vadd.f32 %v1157_v2, %v1696_v0 }
 0x162   : > { %v505_v6 = vpop.f32.mrf.mxu0 }
 0x163   : > { %v506_v7 = vadd.f32 %v1696_v0, %v505_v6  ;;  %1232 = vmatprep.mubr.f32.mxu1 %v574_v3  ;;  %v577_v10 = vmax.f32 %v511_v5, 0.0 }
 0x164   : > { %v1160_v8 = vpop.f32.mrf.mxu0  ;;  %1233 = vmatmul.mubr.f32.gmra.mxu1 %v575_v4 }
 0x165   : > { %v576_v9 = vmax.f32 %v506_v7, 0.0  ;;  %v521_v11 = vadd.f32 %v1160_v8, %v1696_v0 }
 0x166   : > { %v515_v12 = vpop.f32.mrf.mxu0 }
 0x167   : > { %v516_v13 = vadd.f32 %v1696_v0, %v515_v12  ;;  %1235 = vmatprep.mubr.f32.mxu1 %v576_v9  ;;  %v579_v16 = vmax.f32 %v521_v11, 0.0 }
 0x168   : > { %v1163_v14 = vpop.f32.mrf.mxu0  ;;  %1236 = vmatmul.mubr.f32.gmra.mxu1 %v577_v10 }
 0x169   : > { %v578_v15 = vmax.f32 %v516_v13, 0.0  ;;  %v531_v17 = vadd.f32 %v1163_v14, %v1696_v0 }
 0x16a   : > { %v525_v18 = vpop.f32.mrf.mxu0 }
 0x16b   : > { %v526_v19 = vadd.f32 %v1696_v0, %v525_v18  ;;  %1238 = vmatprep.mubr.f32.mxu1 %v578_v15  ;;  %v581_v22 = vmax.f32 %v531_v17, 0.0 }
 0x16c   : > { %v1166_v20 = vpop.f32.mrf.mxu0  ;;  %1239 = vmatmul.mubr.f32.gmra.mxu1 %v579_v16 }
 0x16d   : > { %v580_v21 = vmax.f32 %v526_v19, 0.0  ;;  %v541_v23 = vadd.f32 %v1166_v20, %v1696_v0 }
 0x16e   : > { %v535_v24 = vpop.f32.mrf.mxu0 }
 0x16f   : > { %v536_v25 = vadd.f32 %v1696_v0, %v535_v24  ;;  %1241 = vmatprep.mubr.f32.mxu1 %v580_v21  ;;  %v583_v28 = vmax.f32 %v541_v23, 0.0 }
 0x170   : > { %v1169_v26 = vpop.f32.mrf.mxu0  ;;  %1242 = vmatmul.mubr.f32.gmra.mxu1 %v581_v22 }
 0x171   : > { %v582_v27 = vmax.f32 %v536_v25, 0.0  ;;  %v551_v29 = vadd.f32 %v1169_v26, %v1696_v0 }
 0x172   : > { %v545_v30 = vpop.f32.mrf.mxu0 }
 0x173   : > { %v546_v31 = vadd.f32 %v1696_v0, %v545_v30  ;;  %1244 = vmatprep.mubr.f32.mxu1 %v582_v27  ;;  %v585_v33 = vmax.f32 %v551_v29, 0.0 }
 0x174   : > { %1245 = vmatmul.mubr.f32.gmra.mxu1 %v583_v28 }
 0x175   : > { %v584_v32 = vmax.f32 %v546_v31, 0.0 }
 0x177   : > { %1247 = vmatprep.mubr.f32.mxu1 %v584_v32 }
 0x178   : > { %1248 = vmatmul.mubr.f32.gmra.mxu1 %v585_v33 }
 0x1fc   : > { %v1204_v35 = vpop.f32.mrf.mxu1 }
 0x1fd   : > { %v681_v36 = vadd.f32 %v1204_v35, %v1733_v34 }
 0x1fe   : > { %v675_v37 = vpop.f32.mrf.mxu1 }
 0x1ff   : > { %835 = vst [vmem:[%s1738_s12 + $0x8] sm:$0xff] %v681_v36  ;;  %v676_v0 = vadd.f32 %v1733_v34, %v675_v37 }
 0x200   : > { %v1207_v38 = vpop.f32.mrf.mxu1 }
 0x201   : > { %834 = vst [vmem:[%s1738_s12] sm:$0xff] %v676_v0  ;;  %v691_v39 = vadd.f32 %v1207_v38, %v1733_v34 }
 0x202   : > { %v685_v40 = vpop.f32.mrf.mxu1 }
 0x203   : > { %837 = vst [vmem:[%s1738_s12 + $0x18] sm:$0xff] %v691_v39  ;;  %v686_v41 = vadd.f32 %v1733_v34, %v685_v40 }
 0x204   : > { %v1210_v42 = vpop.f32.mrf.mxu1 }
 0x205   : > { %836 = vst [vmem:[%s1738_s12 + $0x10] sm:$0xff] %v686_v41  ;;  %v701_v43 = vadd.f32 %v1210_v42, %v1733_v34 }
 0x206   : > { %v695_v44 = vpop.f32.mrf.mxu1 }
 0x207   : > { %839 = vst [vmem:[%s1738_s12 + $0x28] sm:$0xff] %v701_v43  ;;  %v696_v45 = vadd.f32 %v1733_v34, %v695_v44 }
 0x208   : > { %v1213_v46 = vpop.f32.mrf.mxu1 }
 0x209   : > { %838 = vst [vmem:[%s1738_s12 + $0x20] sm:$0xff] %v696_v45  ;;  %v711_v47 = vadd.f32 %v1213_v46, %v1733_v34 }
 0x20a   : > { %v705_v48 = vpop.f32.mrf.mxu1 }
 0x20b   : > { %841 = vst [vmem:[%s1738_s12 + $0x38] sm:$0xff] %v711_v47  ;;  %v706_v49 = vadd.f32 %v1733_v34, %v705_v48 }
 0x20c   : > { %v1216_v50 = vpop.f32.mrf.mxu1 }
 0x20d   : > { %840 = vst [vmem:[%s1738_s12 + $0x30] sm:$0xff] %v706_v49  ;;  %v721_v51 = vadd.f32 %v1216_v50, %v1733_v34 }
 0x20e   : > { %v715_v52 = vpop.f32.mrf.mxu1 }
 0x20f   : > { %843 = vst [vmem:[%s1738_s12 + $0x48] sm:$0xff] %v721_v51  ;;  %v716_v53 = vadd.f32 %v1733_v34, %v715_v52 }
 0x210   : > { %v1219_v54 = vpop.f32.mrf.mxu1 }
 0x211   : > { %842 = vst [vmem:[%s1738_s12 + $0x40] sm:$0xff] %v716_v53  ;;  %v731_v55 = vadd.f32 %v1219_v54, %v1733_v34 }
 0x212   : > { %v725_v56 = vpop.f32.mrf.mxu1 }
 0x213   : > { %845 = vst [vmem:[%s1738_s12 + $0x58] sm:$0xff] %v731_v55  ;;  %v726_v57 = vadd.f32 %v1733_v34, %v725_v56 }
 0x214   : > { %v1222_v58 = vpop.f32.mrf.mxu1 }
 0x215   : > { %844 = vst [vmem:[%s1738_s12 + $0x50] sm:$0xff] %v726_v57  ;;  %v741_v59 = vadd.f32 %v1222_v58, %v1733_v34 }
 0x216   : > { %v735_v60 = vpop.f32.mrf.mxu1 }
 0x217   : > { %847 = vst [vmem:[%s1738_s12 + $0x68] sm:$0xff] %v741_v59  ;;  %v736_v61 = vadd.f32 %v1733_v34, %v735_v60 }
 0x218   : > { %v1225_v62 = vpop.f32.mrf.mxu1 }
 0x219   : > { %846 = vst [vmem:[%s1738_s12 + $0x60] sm:$0xff] %v736_v61  ;;  %v751_v63 = vadd.f32 %v1225_v62, %v1733_v34 }
 0x21a   : > { %v745_v1 = vpop.f32.mrf.mxu1 }
 0x21b   : > { %849 = vst [vmem:[%s1738_s12 + $0x78] sm:$0xff] %v751_v63  ;;  %v746_v2 = vadd.f32 %v1733_v34, %v745_v1 }
 0x21c   : > { %v1228_v3 = vpop.f32.mrf.mxu1 }
 0x21d   : > { %848 = vst [vmem:[%s1738_s12 + $0x70] sm:$0xff] %v746_v2  ;;  %v761_v4 = vadd.f32 %v1228_v3, %v1733_v34 }
 0x21e   : > { %v755_v5 = vpop.f32.mrf.mxu1 }
 0x21f   : > { %851 = vst [vmem:[%s1738_s12 + $0x88] sm:$0xff] %v761_v4  ;;  %v756_v6 = vadd.f32 %v1733_v34, %v755_v5 }
 0x220   : > { %v1231_v7 = vpop.f32.mrf.mxu1 }
 0x221   : > { %850 = vst [vmem:[%s1738_s12 + $0x80] sm:$0xff] %v756_v6  ;;  %v771_v8 = vadd.f32 %v1231_v7, %v1733_v34 }
 0x222   : > { %v765_v9 = vpop.f32.mrf.mxu1 }
 0x223   : > { %853 = vst [vmem:[%s1738_s12 + $0x98] sm:$0xff] %v771_v8  ;;  %v766_v10 = vadd.f32 %v1733_v34, %v765_v9 }
 0x224   : > { %v1234_v11 = vpop.f32.mrf.mxu1 }
 0x225   : > { %852 = vst [vmem:[%s1738_s12 + $0x90] sm:$0xff] %v766_v10  ;;  %v781_v12 = vadd.f32 %v1234_v11, %v1733_v34 }
 0x226   : > { %v775_v13 = vpop.f32.mrf.mxu1 }
 0x227   : > { %855 = vst [vmem:[%s1738_s12 + $0xa8] sm:$0xff] %v781_v12  ;;  %v776_v14 = vadd.f32 %v1733_v34, %v775_v13 }
 0x228   : > { %v1237_v15 = vpop.f32.mrf.mxu1 }
 0x229   : > { %854 = vst [vmem:[%s1738_s12 + $0xa0] sm:$0xff] %v776_v14  ;;  %v791_v16 = vadd.f32 %v1237_v15, %v1733_v34 }
 0x22a   : > { %v785_v17 = vpop.f32.mrf.mxu1 }
 0x22b   : > { %857 = vst [vmem:[%s1738_s12 + $0xb8] sm:$0xff] %v791_v16  ;;  %v786_v18 = vadd.f32 %v1733_v34, %v785_v17 }
 0x22c   : > { %v1240_v19 = vpop.f32.mrf.mxu1 }
 0x22d   : > { %856 = vst [vmem:[%s1738_s12 + $0xb0] sm:$0xff] %v786_v18  ;;  %v801_v20 = vadd.f32 %v1240_v19, %v1733_v34 }
 0x22e   : > { %v795_v21 = vpop.f32.mrf.mxu1 }
 0x22f   : > { %859 = vst [vmem:[%s1738_s12 + $0xc8] sm:$0xff] %v801_v20  ;;  %v796_v22 = vadd.f32 %v1733_v34, %v795_v21 }
 0x230   : > { %v1243_v23 = vpop.f32.mrf.mxu1 }
 0x231   : > { %858 = vst [vmem:[%s1738_s12 + $0xc0] sm:$0xff] %v796_v22  ;;  %v811_v24 = vadd.f32 %v1243_v23, %v1733_v34 }
 0x232   : > { %v805_v25 = vpop.f32.mrf.mxu1 }
 0x233   : > { %861 = vst [vmem:[%s1738_s12 + $0xd8] sm:$0xff] %v811_v24  ;;  %v806_v26 = vadd.f32 %v1733_v34, %v805_v25 }
 0x234   : > { %v1246_v27 = vpop.f32.mrf.mxu1 }
 0x235   : > { %860 = vst [vmem:[%s1738_s12 + $0xd0] sm:$0xff] %v806_v26  ;;  %v821_v28 = vadd.f32 %v1246_v27, %v1733_v34 }
 0x236   : > { %v815_v29 = vpop.f32.mrf.mxu1 }
 0x237   : > { %863 = vst [vmem:[%s1738_s12 + $0xe8] sm:$0xff] %v821_v28  ;;  %v816_v30 = vadd.f32 %v1733_v34, %v815_v29 }
 0x238   : > { %v1249_v31 = vpop.f32.mrf.mxu1 }
 0x239   : > { %862 = vst [vmem:[%s1738_s12 + $0xe0] sm:$0xff] %v816_v30  ;;  %v831_v32 = vadd.f32 %v1249_v31, %v1733_v34 }
 0x23a   : > { %v825_v33 = vpop.f32.mrf.mxu1 }
 0x23b   : > { %865 = vst [vmem:[%s1738_s12 + $0xf8] sm:$0xff] %v831_v32  ;;  %v826_v35 = vadd.f32 %v1733_v34, %v825_v33 }
 0x23d   : > { %864 = vst [vmem:[%s1738_s12 + $0xf0] sm:$0xff] %v826_v35 }
 0x23e   : > { %1414 = shalt.err (!%p1411_p3)
}
 0x23f   : > { %s1415_s13 = scalar_lea.hbm %s1805_s11, 4096  ;;  %s1419_s9 = scalar_lea.hbm %s1858_s5, 8192 }
 0x240   : > { %p1416_p11 = scmp.ne.s32.totalorder %s1805_s11, %s1415_s13  ;;  %p1420_p4 = scmp.lt.s32.totalorder %s1805_s11, %s1858_s5 }
 0x241   : > { %p1421_p6 = scmp.lt.s32.totalorder %s1419_s9, %s1415_s13 }
 0x242   : > { %p1417_p9 = pnand %p1416_p11, %p1875_p2 }
 0x243   : > { %p1422_p8 = por %p1421_p6, %p1420_p4 }
 0x244   : > { %p1418_p1 = pneg %p1417_p9 }
 0x246   : > { %p1423_p5 = pnand %p1422_p8, %p1418_p1 }
 0x248   : > { %1426 = shalt.err (!%p1423_p5)
}
 0x249   : > { %s1477_s14 = smov 128   ;;  %s1478_s7 = smov 8  }
 0x24a   : > { %1260 = dma.vmem_to_hbm [thread:$0]  (%p1875_p2), %s1807_s6, 4096, %s1805_s11, %s867_s22, %s1477_s14, %s1477_s14, %s1478_s7  }
 0x24b PF: > { %s895_s28 = sand.u32 1, %s1457_s18   ;;  %p1876_p7 = scmp.ne.s32.totalorder %s1865_s25, 0 }
 0x24c   : > { %p1877_p12 = scmp.ge.s32.totalorder %s1469_s21, 2  ;;  %s896_s17 = scalar_lea.sflag [#allocation4], %s895_s28 }
 0x24e   : > { %p1274_p13 = pnand %p1877_p12, %p1876_p7 }
 0x250   : > { %p1275_p0 = pneg %p1274_p13 }
 0x252   : > { %1452 = dma.done.wait (%p1275_p0), %s896_s17, 4096  }
 0x253   : > { %1454 = vsyncadd (%p1275_p0), %s896_s17, 4294963200  ;;  %p19_p10 = scmp.ge.s32.totalorder %s1587_s15, 4   ;;  %s1878_s18 = smov %s1461_s19 }
 0x254   : > { %s1879_s19 = smov %s1465_s20  ;;  %s1880_s20 = smov %s1603_s27 }
 0x255   : > { %s1881_s21 = smov %s1587_s15  ;;  %21 = sbr.rel (!%p19_p10) target bundleno = 6 (0x6), region = 93 }
 0x25a   :  { %901 = vsyncpa [#allocation3], 1 }
 0x25b   :  { %903 = vsyncpa [#allocation3 + $0x1], 1 }
 0x25c   :  { %904 = vsyncpa [#allocation6], 1 }
 0x25d   :  { %905 = vsyncpa [#allocation4], 1 }
 0x25e   :  { %907 = vsyncpa [#allocation4 + $0x1], 1 }

</bundles_post_ra>
